<compile_context>
chip_gen: v7x
topology: tpu7x:2x2x1
jax: 0.10.0
libtpu: 0.0.40
codegen_flags: <defaults>
</compile_context>

<pallas_src>
import functools

import jax
import jax.numpy as jnp
from jax.experimental import pallas as pl
from jax.experimental.pallas import tpu as pltpu


def _round_up(n, m):
    return ((n + m - 1) // m) * m


def actor_kernel(x_ref, w1_ref, w23_ref, wmu_ref, bpack_ref, out_ref, *, hid_p, act_p):
    """One batch tile of the 4-layer Actor MLP, fully fused in VMEM.

    x_ref    : (TB, OBS)         f32   (obs left un-padded; full-extent last dim)
    w1_ref   : (OBS, HID_P)      f32   [in, out] layout
    w23_ref  : (2*HID_P, HID_P)  f32   rows [0:HID_P]=w2, [HID_P:2*HID_P]=w3
    wmu_ref  : (HID_P, ACT_P)    f32
    bpack_ref: (8, PW)           f32   rows: b1, b2, b3, bmu, action_scale, action_bias
    out_ref  : (TB, ACT_P)       f32
    """
    x = x_ref[...]
    bp = bpack_ref[...]

    h = jnp.dot(x, w1_ref[...], preferred_element_type=jnp.float32) + bp[0:1, :hid_p]
    h = jnp.maximum(h, 0.0)

    h = jnp.dot(h, w23_ref[0:hid_p, :], preferred_element_type=jnp.float32) + bp[1:2, :hid_p]
    h = jnp.maximum(h, 0.0)

    h = jnp.dot(h, w23_ref[hid_p:2 * hid_p, :], preferred_element_type=jnp.float32) + bp[2:3, :hid_p]
    h = jnp.maximum(h, 0.0)

    mu = jnp.tanh(
        jnp.dot(h, wmu_ref[...], preferred_element_type=jnp.float32) + bp[3:4, :act_p]
    )
    out_ref[...] = mu * bp[4:5, :act_p] + bp[5:6, :act_p]


def prepare_actor_params(params):
    """One-time padding / packing of the Actor parameters.

    Re-run whenever the raw parameters change (e.g. after each optimizer step);
    `actor_forward` then issues no per-call packing HLOs.
    Returns (w1_p, w23, wmu_p, bpack).
    """
    (w1, b1, w2, b2, w3, b3, wmu, bmu, scale, bias) = params
    obs, hid = w1.shape
    act = wmu.shape[1]

    HID_P = _round_up(hid, 128)  # lane-dense hidden dim (zero padding is exact)
    ACT_P = _round_up(act, 128)  # lane-dense output store (unmasked vst)
    PW = max(HID_P, ACT_P)

    def pad2(a, rows, cols):
        a = a.astype(jnp.float32)
        return jnp.pad(a, ((0, rows - a.shape[0]), (0, cols - a.shape[1])))

    w1_p = pad2(w1, obs, HID_P)  # first dim stays at the raw obs extent (matches x)
    w23 = jnp.concatenate([pad2(w2, HID_P, HID_P), pad2(w3, HID_P, HID_P)], axis=0)
    wmu_p = pad2(wmu, HID_P, ACT_P)

    # Pack the six (1, out) row vectors into one (8, PW) slab: one DMA, one vreg pair.
    bpack = jnp.zeros((8, PW), jnp.float32)
    bpack = bpack.at[0, :hid].set(b1.reshape(-1).astype(jnp.float32))
    bpack = bpack.at[1, :hid].set(b2.reshape(-1).astype(jnp.float32))
    bpack = bpack.at[2, :hid].set(b3.reshape(-1).astype(jnp.float32))
    bpack = bpack.at[3, :act].set(bmu.reshape(-1).astype(jnp.float32))
    bpack = bpack.at[4, :act].set(scale.reshape(-1).astype(jnp.float32))
    bpack = bpack.at[5, :act].set(bias.reshape(-1).astype(jnp.float32))

    return (w1_p, w23, wmu_p, bpack)


def actor_forward(x, prepped, *, act, max_batch_tile=1024, min_grid=1):
    """Fused Actor forward over a prepared parameter pack.

    min_grid: keep >= 2 on v7x so the "parallel" batch axis can split across its two
    TensorCores; 1 (a single big tile) minimizes per-step overhead on v5e/v6e.
    """
    w1_p, w23, wmu_p, bpack = prepped
    B, obs = x.shape
    HID_P = w23.shape[1]
    ACT_P = wmu_p.shape[1]
    PW = bpack.shape[1]
    assert w1_p.shape[0] == obs

    # Balanced batch tiling: few grid steps, tiles of equal size, only a sublane
    # (<=8 row) remainder of padding for ragged batches.
    num_tiles = max(min_grid, pl.cdiv(B, max_batch_tile))
    TB = _round_up(pl.cdiv(B, num_tiles), 8)
    B_pad = num_tiles * TB

    x_p = jnp.pad(x, ((0, B_pad - B), (0, 0))) if B_pad != B else x

    kernel = functools.partial(actor_kernel, hid_p=HID_P, act_p=ACT_P)

    out_p = pl.pallas_call(
        kernel,
        out_shape=jax.ShapeDtypeStruct((B_pad, ACT_P), jnp.float32),
        grid=(num_tiles,),
        in_specs=[
            # x: pipelined per batch tile; last dim is the full (un-padded) obs extent.
            pl.BlockSpec((TB, obs), lambda i: (i, 0)),
            # Weights / bias-pack: constant index_map -> DMA'd once, VMEM-resident.
            pl.BlockSpec((obs, HID_P), lambda i: (0, 0)),
            pl.BlockSpec((2 * HID_P, HID_P), lambda i: (0, 0)),
            pl.BlockSpec((HID_P, ACT_P), lambda i: (0, 0)),
            pl.BlockSpec((8, PW), lambda i: (0, 0)),
        ],
        out_specs=pl.BlockSpec((TB, ACT_P), lambda i: (i, 0)),
        compiler_params=pltpu.CompilerParams(
            dimension_semantics=("parallel",),
        ),
    )(x_p, w1_p, w23, wmu_p, bpack)

    return out_p[:B, :act]


def init_linear(key, fan_in, fan_out):
    """Deterministic PyTorch-style Linear init; weight returned as [in, out]."""
    kw, kb = jax.random.split(key)
    bound = 1.0 / jnp.sqrt(jnp.float32(fan_in))
    w = jax.random.uniform(kw, (fan_in, fan_out), jnp.float32, -bound, bound)
    b = jax.random.uniform(kb, (1, fan_out), jnp.float32, -bound, bound)
    return w, b


def actor_reference(x, params):
    (w1, b1, w2, b2, w3, b3, wmu, bmu, scale, bias) = params
    h = jax.nn.relu(x @ w1 + b1)
    h = jax.nn.relu(h @ w2 + b2)
    h = jax.nn.relu(h @ w3 + b3)
    mu = jnp.tanh(h @ wmu + bmu)
    return mu * scale + bias


if __name__ == "__main__":
    OBS, HID, ACT = 16, 64, 8

    key = jax.random.PRNGKey(0)
    k_x, k1, k2, k3, k4, k_s = jax.random.split(key, 6)

    w1, b1 = init_linear(k1, OBS, HID)
    w2, b2 = init_linear(k2, HID, HID)
    w3, b3 = init_linear(k3, HID, HID)
    wmu, bmu = init_linear(k4, HID, ACT)

    # Synthetic action-space bounds: low = -high  ->  scale = high, bias = 0.
    high = jax.random.uniform(k_s, (1, ACT), jnp.float32, 0.5, 2.0)
    low = -high
    action_scale = (high - low) / 2.0
    action_bias = (high + low) / 2.0

    params = (w1, b1, w2, b2, w3, b3, wmu, bmu, action_scale, action_bias)

    # One-time pack/pad (re-run only when params change).
    prepped = prepare_actor_params(params)

    # jit the per-call path so (batch pad) + pallas_call + slice are one executable.
    fwd = jax.jit(functools.partial(actor_forward, act=ACT))            # v5e/v6e style
    fwd_2tile = jax.jit(functools.partial(actor_forward, act=ACT, min_grid=2))  # v7x style

    # Small batch: single grid step, no batch padding.
    x_small = jax.random.normal(k_x, (8, OBS), jnp.float32)
    out_small = jax.block_until_ready(fwd(x_small, prepped))
    ref_small = actor_reference(x_small, params)
    assert out_small.shape == (8, ACT)
    assert jnp.allclose(out_small, ref_small, atol=1e-5, rtol=1e-5), "mismatch (B=8)"

    # Ragged batch with two balanced tiles (v7x-style grid=2): exercises the
    # pipelined multi-step path and the sublane-remainder batch padding.
    x_rag = jax.random.normal(k_x, (200, OBS), jnp.float32)
    out_rag = jax.block_until_ready(fwd_2tile(x_rag, prepped))
    ref_rag = actor_reference(x_rag, params)
    assert out_rag.shape == (200, ACT)
    assert jnp.allclose(out_rag, ref_rag, atol=1e-5, rtol=1e-5), "mismatch (B=200)"

    print("KERNEL_OK")
</pallas_src>

<mosaic_0001>
module attributes {stable_mosaic.version = 11 : i64} {
  func.func @actor_kernel(%arg0: i32, %arg1: memref<8x16xf32, #tpu.memory_space<vmem>>, %arg2: memref<16x128xf32, #tpu.memory_space<vmem>>, %arg3: memref<256x128xf32, #tpu.memory_space<vmem>>, %arg4: memref<128x128xf32, #tpu.memory_space<vmem>>, %arg5: memref<8x128xf32, #tpu.memory_space<vmem>>, %arg6: memref<8x128xf32, #tpu.memory_space<vmem>>) attributes {dimension_semantics = [#tpu.dimension_semantics<parallel>], iteration_bounds = array<i64: 1>, scalar_prefetch = 0 : i64, scratch_operands = 0 : i64, tpu.core_type = #tpu.core_type<tc>, window_params = [{transform_indices = @transform_0, window_bounds = array<i64: 8, 16>}, {pipeline_mode = #tpu.pipeline_mode<synchronous>, transform_indices = @transform_1, window_bounds = array<i64: 16, 128>}, {pipeline_mode = #tpu.pipeline_mode<synchronous>, transform_indices = @transform_2, window_bounds = array<i64: 256, 128>}, {pipeline_mode = #tpu.pipeline_mode<synchronous>, transform_indices = @transform_3, window_bounds = array<i64: 128, 128>}, {pipeline_mode = #tpu.pipeline_mode<synchronous>, transform_indices = @transform_4, window_bounds = array<i64: 8, 128>}, {transform_indices = @transform_5, window_bounds = array<i64: 8, 128>}]} {
    %c0 = arith.constant 0 : index
    %c0_0 = arith.constant 0 : index
    %0 = vector.load %arg1[%c0, %c0_0] : memref<8x16xf32, #tpu.memory_space<vmem>>, vector<8x16xf32>
    %c0_1 = arith.constant 0 : index
    %c0_2 = arith.constant 0 : index
    %1 = vector.load %arg5[%c0_1, %c0_2] : memref<8x128xf32, #tpu.memory_space<vmem>>, vector<8x128xf32>
    %c0_3 = arith.constant 0 : index
    %c0_4 = arith.constant 0 : index
    %2 = vector.load %arg2[%c0_3, %c0_4] : memref<16x128xf32, #tpu.memory_space<vmem>>, vector<16x128xf32>
    %cst = arith.constant dense<0.000000e+00> : vector<8x128xf32>
    %3 = tpu.matmul %0, %2, %cst {dimension_numbers = #tpu.dot_dimension_numbers<[1], [0], [0], [1], [0, 0, 1, 1], [], []>} : vector<8x16xf32>, vector<16x128xf32>, vector<8x128xf32> -> vector<8x128xf32>
    %4 = vector.extract_strided_slice %1 {offsets = [0, 0], sizes = [1, 128], strides = [1, 1]} : vector<8x128xf32> to vector<1x128xf32>
    %5 = vector.broadcast %4 : vector<1x128xf32> to vector<8x128xf32>
    %6 = arith.addf %3, %5 : vector<8x128xf32>
    %cst_5 = arith.constant 0.000000e+00 : f32
    %7 = vector.broadcast %cst_5 : f32 to vector<8x128xf32>
    %8 = arith.maximumf %6, %7 : vector<8x128xf32>
    %c0_6 = arith.constant 0 : index
    %c0_7 = arith.constant 0 : index
    %9 = vector.load %arg3[%c0_6, %c0_7] : memref<256x128xf32, #tpu.memory_space<vmem>>, vector<128x128xf32>
    %cst_8 = arith.constant dense<0.000000e+00> : vector<8x128xf32>
    %10 = tpu.matmul %8, %9, %cst_8 {dimension_numbers = #tpu.dot_dimension_numbers<[1], [0], [0], [1], [0, 0, 1, 1], [], []>} : vector<8x128xf32>, vector<128x128xf32>, vector<8x128xf32> -> vector<8x128xf32>
    %11 = vector.extract_strided_slice %1 {offsets = [1, 0], sizes = [1, 128], strides = [1, 1]} : vector<8x128xf32> to vector<1x128xf32>
    %12 = vector.broadcast %11 : vector<1x128xf32> to vector<8x128xf32>
    %13 = arith.addf %10, %12 : vector<8x128xf32>
    %cst_9 = arith.constant 0.000000e+00 : f32
    %14 = vector.broadcast %cst_9 : f32 to vector<8x128xf32>
    %15 = arith.maximumf %13, %14 : vector<8x128xf32>
    %c128 = arith.constant 128 : index
    %c0_10 = arith.constant 0 : index
    %16 = vector.load %arg3[%c128, %c0_10] : memref<256x128xf32, #tpu.memory_space<vmem>>, vector<128x128xf32>
    %cst_11 = arith.constant dense<0.000000e+00> : vector<8x128xf32>
    %17 = tpu.matmul %15, %16, %cst_11 {dimension_numbers = #tpu.dot_dimension_numbers<[1], [0], [0], [1], [0, 0, 1, 1], [], []>} : vector<8x128xf32>, vector<128x128xf32>, vector<8x128xf32> -> vector<8x128xf32>
    %18 = vector.extract_strided_slice %1 {offsets = [2, 0], sizes = [1, 128], strides = [1, 1]} : vector<8x128xf32> to vector<1x128xf32>
    %19 = vector.broadcast %18 : vector<1x128xf32> to vector<8x128xf32>
    %20 = arith.addf %17, %19 : vector<8x128xf32>
    %cst_12 = arith.constant 0.000000e+00 : f32
    %21 = vector.broadcast %cst_12 : f32 to vector<8x128xf32>
    %22 = arith.maximumf %20, %21 : vector<8x128xf32>
    %c0_13 = arith.constant 0 : index
    %c0_14 = arith.constant 0 : index
    %23 = vector.load %arg4[%c0_13, %c0_14] : memref<128x128xf32, #tpu.memory_space<vmem>>, vector<128x128xf32>
    %cst_15 = arith.constant dense<0.000000e+00> : vector<8x128xf32>
    %24 = tpu.matmul %22, %23, %cst_15 {dimension_numbers = #tpu.dot_dimension_numbers<[1], [0], [0], [1], [0, 0, 1, 1], [], []>} : vector<8x128xf32>, vector<128x128xf32>, vector<8x128xf32> -> vector<8x128xf32>
    %25 = vector.extract_strided_slice %1 {offsets = [3, 0], sizes = [1, 128], strides = [1, 1]} : vector<8x128xf32> to vector<1x128xf32>
    %26 = vector.broadcast %25 : vector<1x128xf32> to vector<8x128xf32>
    %27 = arith.addf %24, %26 : vector<8x128xf32>
    %28 = math.tanh %27 : vector<8x128xf32>
    %29 = vector.extract_strided_slice %1 {offsets = [4, 0], sizes = [1, 128], strides = [1, 1]} : vector<8x128xf32> to vector<1x128xf32>
    %30 = vector.broadcast %29 : vector<1x128xf32> to vector<8x128xf32>
    %31 = arith.mulf %28, %30 : vector<8x128xf32>
    %32 = vector.extract_strided_slice %1 {offsets = [5, 0], sizes = [1, 128], strides = [1, 1]} : vector<8x128xf32> to vector<1x128xf32>
    %33 = vector.broadcast %32 : vector<1x128xf32> to vector<8x128xf32>
    %34 = arith.addf %31, %33 : vector<8x128xf32>
    %c0_16 = arith.constant 0 : index
    %c0_17 = arith.constant 0 : index
    %35 = vector.load %arg6[%c0_16, %c0_17] : memref<8x128xf32, #tpu.memory_space<vmem>>, vector<8x128xf32>
    tpu.vector_store %arg6[%c0_16, %c0_17], %34 {strides = array<i32>} : memref<8x128xf32, #tpu.memory_space<vmem>>, vector<8x128xf32>,
    return
  }
  func.func @transform_0(%arg0: i32) -> (i32, i32) {
    %c0_i32 = arith.constant 0 : i32
    %c0_i32_0 = arith.constant 0 : i32
    return %arg0, %c0_i32 : i32, i32
  }
  func.func @transform_1(%arg0: i32) -> (i32, i32) {
    %c0_i32 = arith.constant 0 : i32
    %c0_i32_0 = arith.constant 0 : i32
    %c0_i32_1 = arith.constant 0 : i32
    return %c0_i32, %c0_i32_0 : i32, i32
  }
  func.func @transform_2(%arg0: i32) -> (i32, i32) {
    %c0_i32 = arith.constant 0 : i32
    %c0_i32_0 = arith.constant 0 : i32
    %c0_i32_1 = arith.constant 0 : i32
    return %c0_i32, %c0_i32_0 : i32, i32
  }
  func.func @transform_3(%arg0: i32) -> (i32, i32) {
    %c0_i32 = arith.constant 0 : i32
    %c0_i32_0 = arith.constant 0 : i32
    %c0_i32_1 = arith.constant 0 : i32
    return %c0_i32, %c0_i32_0 : i32, i32
  }
  func.func @transform_4(%arg0: i32) -> (i32, i32) {
    %c0_i32 = arith.constant 0 : i32
    %c0_i32_0 = arith.constant 0 : i32
    %c0_i32_1 = arith.constant 0 : i32
    return %c0_i32, %c0_i32_0 : i32, i32
  }
  func.func @transform_5(%arg0: i32) -> (i32, i32) {
    %c0_i32 = arith.constant 0 : i32
    %c0_i32_0 = arith.constant 0 : i32
    return %arg0, %c0_i32 : i32, i32
  }
}

</mosaic_0001>

<bundles_post_ra>
// kernel: actor_forward.1
= control target key start
LH: loop header
LB: loop body
LE: loop exit
PB: predicated region body
PF: predicated region fallthrough
CT: control target
= control target key end

     0   :  { %10 = vsyncpa [#allocation3], 0  ;;  %s991_s0 = inlined_call_operand.hbm [shape: f32[8,16], index: 0, kind: input, shape index: {}]   ;;  %s992_s1 = inlined_call_operand.hbm [shape: f32[16,128], index: 1, kind: input, shape index: {}]   ;;  %s993_s2 = inlined_call_operand.hbm [shape: f32[256,128], index: 2, kind: input, shape index: {}]   ;;  %s994_s3 = inlined_call_operand.hbm [shape: f32[128,128], index: 3, kind: input, shape index: {}]   ;;  %s995_s4 = inlined_call_operand.vmem [shape: f32[8,128], index: 4, kind: input, shape index: {}]   ;;  %s996_s5 = inlined_call_operand.hbm [shape: f32[8,128], index: 5, kind: output, shape index: {}]  }
   0x1   :  { %11 = vsyncpa [#allocation6], 0 }
   0x2   :  { %12 = vsyncpa [#allocation9], 0 }
   0x3   :  { %13 = vsyncpa [#allocation4], 0  ;;  %s830_s18 = smov [#allocation5]   ;;  %s712_s22 = scalar_lea.hbm %s992_s1, 256 }
   0x4   :  { %s29_s19 = sshll.u32 %s830_s18, 4  ;;  %p713_p0 = scmp.ne.s32.totalorder %s992_s1, %s712_s22  ;;  %s30_s19 = int_to_ptr.vmem [resolvable:$true] %s29_s19 }
   0x5   :  { %p716_p1 = scmp.lt.u32.totalorder %s712_s22, %s992_s1 }
   0x7   :  { %p718_p2 = pnand %p716_p1, %p713_p0 }
   0x9   :  { %721 = shalt.err (!%p718_p2)
}
   0xa   :  { %s722_s27 = scalar_lea.vmem %s30_s19, 256  ;;  %p727_p4 = scmp.lt.s32.totalorder %s30_s19, %s30_s19 }
   0xb   :  { %p723_p3 = scmp.ne.s32.totalorder %s30_s19, %s722_s27  ;;  %p728_p5 = scmp.lt.s32.totalorder %s722_s27, %s722_s27 }
   0xd   :  { %p729_p6 = por %p728_p5, %p727_p4 }
   0xf   :  { %p730_p7 = pnand %p729_p6, %p723_p3 }
  0x11   :  { %733 = shalt.err (!%p730_p7)
}
  0x12   :  { %s831_s28 = smov 128   ;;  %s832_s29 = smov 8  }
  0x13   :  { %35 = dma.hbm_to_vmem [thread:$0]  %s992_s1, 256, %s30_s19, [#allocation6], %s831_s28, %s831_s28, %s832_s29  }
  0x14   :  { %s833_s7 = smov [#allocation2]   ;;  %s834_s9 = smov [#allocation7]  }
  0x15   :  { %s20_s8 = sshll.u32 %s833_s7, 4  ;;  %s41_s10 = sshll.u32 %s834_s9, 4  ;;  %s21_s8 = int_to_ptr.vmem [resolvable:$true] %s20_s8  ;;  %s42_s10 = int_to_ptr.vmem [resolvable:$true] %s41_s10 }
  0x16   :  { %s734_s13 = scalar_lea.hbm %s991_s0, 128 }
  0x17   :  { %p735_p8 = scmp.ne.s32.totalorder %s991_s0, %s734_s13  ;;  %p738_p9 = scmp.lt.u32.totalorder %s734_s13, %s991_s0 }
  0x19   :  { %p740_p10 = pnand %p738_p9, %p735_p8 }
  0x1b   :  { %743 = shalt.err (!%p740_p10)
}
  0x1c   :  { %s744_s1 = scalar_lea.vmem %s21_s8, 128  ;;  %p749_p12 = scmp.lt.s32.totalorder %s21_s8, %s21_s8 }
  0x1d   :  { %p745_p11 = scmp.ne.s32.totalorder %s21_s8, %s744_s1  ;;  %p750_p13 = scmp.lt.s32.totalorder %s744_s1, %s744_s1 }
  0x1f   :  { %p751_p0 = por %p750_p13, %p749_p12 }
  0x21   :  { %p752_p1 = pnand %p751_p0, %p745_p11 }
  0x23   :  { %755 = shalt.err (!%p752_p1)
}
  0x24   :  { %23 = dma.hbm_to_vmem [thread:$0]  %s991_s0, 128, %s21_s8, [#allocation3]  }
  0x25   :  { %s756_s22 = scalar_lea.hbm %s993_s2, 4096 }
  0x26   :  { %p757_p2 = scmp.ne.s32.totalorder %s993_s2, %s756_s22  ;;  %p760_p3 = scmp.lt.u32.totalorder %s756_s22, %s993_s2 }
  0x28   :  { %p762_p4 = pnand %p760_p3, %p757_p2 }
  0x2a   :  { %765 = shalt.err (!%p762_p4)
}
  0x2b   :  { %s766_s27 = scalar_lea.vmem %s42_s10, 4096  ;;  %p771_p6 = scmp.lt.s32.totalorder %s42_s10, %s42_s10 }
  0x2c   :  { %p767_p5 = scmp.ne.s32.totalorder %s42_s10, %s766_s27  ;;  %p772_p7 = scmp.lt.s32.totalorder %s766_s27, %s766_s27 }
  0x2e   :  { %p773_p8 = por %p772_p7, %p771_p6 }
  0x30   :  { %p774_p9 = pnand %p773_p8, %p767_p5 }
  0x32   :  { %777 = shalt.err (!%p774_p9)
}
  0x33   :  { %47 = dma.hbm_to_vmem [thread:$0]  %s993_s2, 4096, %s42_s10, [#allocation6], %s831_s28, %s831_s28, %s832_s29  }
  0x34   :  { %s835_s6 = smov [#allocation8]   ;;  %s778_s11 = scalar_lea.hbm %s994_s3, 2048 }
  0x35   :  { %s53_s7 = sshll.u32 %s835_s6, 4  ;;  %p779_p10 = scmp.ne.s32.totalorder %s994_s3, %s778_s11  ;;  %s54_s7 = int_to_ptr.vmem [resolvable:$true] %s53_s7 }
  0x36   :  { %p782_p11 = scmp.lt.u32.totalorder %s778_s11, %s994_s3 }
  0x38   :  { %p784_p12 = pnand %p782_p11, %p779_p10 }
  0x3a   :  { %787 = shalt.err (!%p784_p12)
}
  0x3b   :  { %s788_s16 = scalar_lea.vmem %s54_s7, 2048  ;;  %p793_p0 = scmp.lt.s32.totalorder %s54_s7, %s54_s7 }
  0x3c   :  { %p789_p13 = scmp.ne.s32.totalorder %s54_s7, %s788_s16  ;;  %p794_p1 = scmp.lt.s32.totalorder %s788_s16, %s788_s16 }
  0x3e   :  { %p795_p2 = por %p794_p1, %p793_p0 }
  0x40   :  { %p796_p3 = pnand %p795_p2, %p789_p13 }
  0x42   :  { %799 = shalt.err (!%p796_p3)
}
  0x43   :  { %59 = dma.hbm_to_vmem [thread:$0]  %s994_s3, 2048, %s54_s7, [#allocation9], %s831_s28, %s831_s28, %s832_s29  }
  0x44   :  { %822 = dma.done.wait [#allocation3], 128  }
  0x45   :  { %823 = vsyncadd [#allocation3], 4294967168 }
  0x46   :  { %824 = dma.done.wait [#allocation6], 4352  }
  0x47   :  { %825 = vsyncadd [#allocation6], 4294962944 }
  0x48   :  { %826 = dma.done.wait [#allocation9], 2048  }
  0x49   :  { %827 = vsyncadd [#allocation9], 4294965248  ;;  %v836_v0 = vmov 0.0|0.0   ;;  %vm837_vm0 = vmmov 0   ;;  %v838_v1 = vmov 0.0   ;;  %v76_v2 = vld [vmem:[#allocation5] sm:$0xff]  ;;  %v78_v51 = vlaneseq }
  0x4a   :  { %625 = vmatprep.subr.bf16.mxu0 %v836_v0  ;;  %517 = vmatprep.mubr.msk.f32.mxu0 %vm837_vm0, %v838_v1  ;;  %v77_v3 = vld [vmem:[#allocation5 + $0x8] sm:$0xff]  ;;  %v157_v5 = vld [vmem:[#allocation7] sm:$0xff]  ;;  %v158_v6 = vld [vmem:[#allocation7 + $0x8] sm:$0xff]  ;;  %vm82_vm1 = vcmask 130048  }
  0x4b   :  { %628 = vmatprep.subr.bf16.mxu1 %v836_v0  ;;  %552 = vmatprep.mubr.msk.f32.mxu1 %vm837_vm0, %v838_v1  ;;  %v626_v4 = vpack.c.bf16 %v77_v3, %v76_v2  ;;  %v159_v7 = vld [vmem:[#allocation7 + $0x10] sm:$0xff]  ;;  %v629_v8 = vpack.c.bf16 %v158_v6, %v157_v5  ;;  %v160_v9 = vld [vmem:[#allocation7 + $0x18] sm:$0xff]  ;;  %v74_v10 = vld [vmem:[#allocation2] sm:$0xff]  ;;  %v951_v52 = vshrl.u32 %v78_v51, 7 }
  0x4c   :  { %v632_v11 = vpack.c.bf16 %v160_v9, %v159_v7  ;;  %v161_v12 = vld [vmem:[#allocation7 + $0x20] sm:$0xff]  ;;  %v162_v13 = vld [vmem:[#allocation7 + $0x28] sm:$0xff]  ;;  %v163_v15 = vld [vmem:[#allocation7 + $0x30] sm:$0xff] }
  0x4d   :  { %627 = vmatpush3.bf16.msra.mxu0 %v626_v4  ;;  %630 = vmatpush3.bf16.msra.mxu1 %v629_v8  ;;  %v635_v14 = vpack.c.bf16 %v162_v13, %v161_v12  ;;  %v164_v16 = vld [vmem:[#allocation7 + $0x38] sm:$0xff]  ;;  %v165_v18 = vld [vmem:[#allocation7 + $0x40] sm:$0xff]  ;;  %v166_v19 = vld [vmem:[#allocation7 + $0x48] sm:$0xff]  ;;  %v80_v53 = vsub.s32 0, %v951_v52 }
  0x4e   :  { %652 = vmatprep.subr.bf16.mxu0 %v836_v0  ;;  %631 = vmatprep.subr.bf16.mxu1 %v836_v0  ;;  %v638_v17 = vpack.c.bf16 %v164_v16, %v163_v15  ;;  %v641_v20 = vpack.c.bf16 %v166_v19, %v165_v18  ;;  %v167_v21 = vld [vmem:[#allocation7 + $0x50] sm:$0xff]  ;;  %v168_v22 = vld [vmem:[#allocation7 + $0x58] sm:$0xff]  ;;  %v169_v24 = vld [vmem:[#allocation7 + $0x60] sm:$0xff] }
  0x4f   :  { %v644_v23 = vpack.c.bf16 %v168_v22, %v167_v21  ;;  %v170_v25 = vld [vmem:[#allocation7 + $0x68] sm:$0xff]  ;;  %v171_v27 = vld [vmem:[#allocation7 + $0x70] sm:$0xff]  ;;  %v172_v28 = vld [vmem:[#allocation7 + $0x78] sm:$0xff]  ;;  %v175_v21 = vsub.s32 1, %v951_v52 }
  0x50   :  { %518 = vmatmul.mubr.msk.f32.vlgmr.msra.gmra.mrb[0].mxu0 %vm82_vm1, %v74_v10  ;;  %v647_v26 = vpack.c.bf16 %v170_v25, %v169_v24  ;;  %v650_v29 = vpack.c.bf16 %v172_v28, %v171_v27  ;;  %v248_v30 = vld [vmem:[#allocation7 + $0x80] sm:$0xff]  ;;  %v249_v31 = vld [vmem:[#allocation7 + $0x88] sm:$0xff]  ;;  %v250_v32 = vld [vmem:[#allocation7 + $0x90] sm:$0xff] }
  0x51   :  { %587 = vmatprep.mubr.msk.f32.mxu0 %vm837_vm0, %v838_v1  ;;  %633 = vmatpush3.bf16.msra.mxu1 %v632_v11  ;;  %v653_v33 = vpack.c.bf16 %v249_v31, %v248_v30  ;;  %v251_v34 = vld [vmem:[#allocation7 + $0x98] sm:$0xff]  ;;  %v252_v36 = vld [vmem:[#allocation7 + $0xa0] sm:$0xff]  ;;  %v253_v37 = vld [vmem:[#allocation7 + $0xa8] sm:$0xff]  ;;  %v266_v30 = vsub.s32 2, %v951_v52 }
  0x52   :  { %634 = vmatprep.subr.bf16.mxu1 %v836_v0  ;;  %v656_v35 = vpack.c.bf16 %v251_v34, %v250_v32  ;;  %v659_v38 = vpack.c.bf16 %v253_v37, %v252_v36  ;;  %v254_v39 = vld [vmem:[#allocation7 + $0xb0] sm:$0xff]  ;;  %v255_v40 = vld [vmem:[#allocation7 + $0xb8] sm:$0xff]  ;;  %v256_v42 = vld [vmem:[#allocation7 + $0xc0] sm:$0xff] }
  0x53   :  { %654 = vmatpush3.bf16.msra.mxu0 %v653_v33  ;;  %v662_v41 = vpack.c.bf16 %v255_v40, %v254_v39  ;;  %v257_v43 = vld [vmem:[#allocation7 + $0xc8] sm:$0xff]  ;;  %v258_v45 = vld [vmem:[#allocation7 + $0xd0] sm:$0xff]  ;;  %v259_v46 = vld [vmem:[#allocation7 + $0xd8] sm:$0xff]  ;;  %v432_v40 = vsub.s32 4, %v951_v52 }
  0x54   :  { %655 = vmatprep.subr.bf16.mxu0 %v836_v0  ;;  %v665_v44 = vpack.c.bf16 %v257_v43, %v256_v42  ;;  %v668_v47 = vpack.c.bf16 %v259_v46, %v258_v45  ;;  %v260_v48 = vld [vmem:[#allocation7 + $0xe0] sm:$0xff]  ;;  %v261_v49 = vld [vmem:[#allocation7 + $0xe8] sm:$0xff]  ;;  %v262_v60 = vld [vmem:[#allocation7 + $0xf0] sm:$0xff] }
  0x55   :  { %636 = vmatpush3.bf16.msra.mxu1 %v635_v14  ;;  %v671_v50 = vpack.c.bf16 %v261_v49, %v260_v48  ;;  %v957_v54 = vld [vmem:[%s995_s4] sm:$0xff]  ;;  %v263_v61 = vld [vmem:[#allocation7 + $0xf8] sm:$0xff]  ;;  %v339_v63 = vld [vmem:[#allocation8] sm:$0xff]  ;;  %s839_s4 = smov [#allocation10]  }
  0x56   :  { %637 = vmatprep.subr.bf16.mxu1 %v836_v0  ;;  %v81_v55 = vrot.slane %v957_v54, %v80_v53  ;;  %v674_v62 = vpack.c.bf16 %v263_v61, %v262_v60  ;;  %v340_v2 = vld [vmem:[#allocation8 + $0x8] sm:$0xff]  ;;  %v341_v3 = vld [vmem:[#allocation8 + $0x10] sm:$0xff]  ;;  %v342_v5 = vld [vmem:[#allocation8 + $0x18] sm:$0xff]  ;;  %v176_v22 = vrot.slane %v957_v54, %v175_v21  ;;  %v267_v31 = vrot.slane %v957_v54, %v266_v30  ;;  %s447_s29 = sshll.u32 %s839_s4, 4  ;;  %s448_s29 = int_to_ptr.vmem [resolvable:$true] %s447_s29 }
  0x57   :  { %657 = vmatpush3.bf16.msra.mxu0 %v656_v35  ;;  %v677_v4 = vpack.c.bf16 %v340_v2, %v339_v63  ;;  %v680_v6 = vpack.c.bf16 %v342_v5, %v341_v3  ;;  %v343_v7 = vld [vmem:[#allocation8 + $0x20] sm:$0xff]  ;;  %v344_v8 = vld [vmem:[#allocation8 + $0x28] sm:$0xff]  ;;  %v346_v10 = vld [vmem:[#allocation8 + $0x38] sm:$0xff]  ;;  %v357_v35 = vsub.s32 3, %v951_v52  ;;  %v433_v42 = vrot.slane %v957_v54, %v432_v40  ;;  %s800_s17 = scalar_lea.vmem %s448_s29, 128  ;;  %p805_p5 = scmp.lt.s32.totalorder %s448_s29, %s448_s29 }
  0x58   :  { %658 = vmatprep.subr.bf16.mxu0 %v836_v0  ;;  %v683_v9 = vpack.c.bf16 %v344_v8, %v343_v7  ;;  %v347_v12 = vld [vmem:[#allocation8 + $0x40] sm:$0xff]  ;;  %v348_v13 = vld [vmem:[#allocation8 + $0x48] sm:$0xff]  ;;  %v349_v15 = vld [vmem:[#allocation8 + $0x50] sm:$0xff]  ;;  %p801_p4 = scmp.ne.s32.totalorder %s448_s29, %s800_s17  ;;  %p806_p6 = scmp.lt.s32.totalorder %s800_s17, %s800_s17 }
  0x59   :  { %639 = vmatpush3.bf16.msra.mxu1 %v638_v17  ;;  %v689_v14 = vpack.c.bf16 %v348_v13, %v347_v12  ;;  %v350_v16 = vld [vmem:[#allocation8 + $0x58] sm:$0xff]  ;;  %v351_v18 = vld [vmem:[#allocation8 + $0x60] sm:$0xff]  ;;  %v352_v19 = vld [vmem:[#allocation8 + $0x68] sm:$0xff]  ;;  %v358_v36 = vrot.slane %v957_v54, %v357_v35 }
  0x5a   :  { %640 = vmatprep.subr.bf16.mxu1 %v836_v0  ;;  %v692_v17 = vpack.c.bf16 %v350_v16, %v349_v15  ;;  %v353_v27 = vld [vmem:[#allocation8 + $0x70] sm:$0xff]  ;;  %v354_v28 = vld [vmem:[#allocation8 + $0x78] sm:$0xff]  ;;  %p807_p7 = por %p806_p6, %p805_p5 }
  0x5b   :  { %660 = vmatpush3.bf16.msra.mxu0 %v659_v38 }
  0x5c   :  { %661 = vmatprep.subr.bf16.mxu0 %v836_v0  ;;  %p808_p8 = pnand %p807_p7, %p801_p4 }
  0x5d   :  { %642 = vmatpush3.bf16.msra.mxu1 %v641_v20  ;;  %v695_v20 = vpack.c.bf16 %v352_v19, %v351_v18 }
  0x5e   :  { %643 = vmatprep.subr.bf16.mxu1 %v836_v0 }
  0x5f   :  { %663 = vmatpush3.bf16.msra.mxu0 %v662_v41  ;;  %v437_v41 = vsub.s32 5, %v951_v52 }
  0x60   :  { %664 = vmatprep.subr.bf16.mxu0 %v836_v0 }
  0x61   :  { %645 = vmatpush3.bf16.msra.mxu1 %v644_v23  ;;  %v438_v43 = vrot.slane %v957_v54, %v437_v41 }
  0x62   :  { %646 = vmatprep.subr.bf16.mxu1 %v836_v0 }
  0x63   :  { %666 = vmatpush3.bf16.msra.mxu0 %v665_v44 }
  0x64   :  { %667 = vmatprep.subr.bf16.mxu0 %v836_v0 }
  0x65   :  { %648 = vmatpush3.bf16.msra.mxu1 %v647_v26 }
  0x66   :  { %649 = vmatprep.subr.bf16.mxu1 %v836_v0 }
  0x67   :  { %669 = vmatpush3.bf16.msra.mxu0 %v668_v47 }
  0x68   :  { %670 = vmatprep.subr.bf16.mxu0 %v836_v0 }
  0x69   :  { %651 = vmatpush3.bf16.msra.mxu1 %v650_v29  ;;  %v698_v29 = vpack.c.bf16 %v354_v28, %v353_v27 }
  0x6a   :  { %676 = vmatprep.subr.bf16.mxu1 %v836_v0 }
  0x6b   :  { %672 = vmatpush3.bf16.msra.mxu0 %v671_v50 }
  0x6c   :  { %673 = vmatprep.subr.bf16.mxu0 %v836_v0 }
  0x6f   :  { %675 = vmatpush3.bf16.msra.mxu0 %v674_v62 }
 0x123   :  { %v152_v56 = vpop.f32.mrb[0].mxu0 }
 0x124   :  { %v153_v57 = vadd.f32 %v152_v56, %v81_v55  ;;  %v519_v58 = vpop.f32.mrb[1].mxu0 }
 0x126   :  { %v156_v59 = vmax.f32 %v153_v57, 0.0 }
 0x128   :  { %553 = vmatmul.mubr.f32.vlgmr.msra.gmra.mrb[0].mxu1 %v156_v59 }
 0x129   :  { %622 = vmatprep.mubr.msk.f32.mxu1 %vm837_vm0, %v838_v1  ;;  %678 = vmatpush3.bf16.msra.mxu1 %v677_v4  ;;  %v345_v1 = vld [vmem:[#allocation8 + $0x30] sm:$0xff] }
 0x12a   :  { %679 = vmatprep.subr.bf16.mxu1 %v836_v0  ;;  %v686_v11 = vpack.c.bf16 %v346_v10, %v345_v1 }
 0x12d   :  { %681 = vmatpush3.bf16.msra.mxu1 %v680_v6 }
 0x12e   :  { %682 = vmatprep.subr.bf16.mxu1 %v836_v0 }
 0x131   :  { %684 = vmatpush3.bf16.msra.mxu1 %v683_v9 }
 0x132   :  { %685 = vmatprep.subr.bf16.mxu1 %v836_v0 }
 0x135   :  { %687 = vmatpush3.bf16.msra.mxu1 %v686_v11 }
 0x136   :  { %688 = vmatprep.subr.bf16.mxu1 %v836_v0 }
 0x139   :  { %690 = vmatpush3.bf16.msra.mxu1 %v689_v14 }
 0x13a   :  { %691 = vmatprep.subr.bf16.mxu1 %v836_v0 }
 0x13d   :  { %693 = vmatpush3.bf16.msra.mxu1 %v692_v17 }
 0x13e   :  { %694 = vmatprep.subr.bf16.mxu1 %v836_v0 }
 0x141   :  { %696 = vmatpush3.bf16.msra.mxu1 %v695_v20 }
 0x142   :  { %697 = vmatprep.subr.bf16.mxu1 %v836_v0 }
 0x145   :  { %699 = vmatpush3.bf16.msra.mxu1 %v698_v29 }
 0x1fb   :  { %v243_v23 = vpop.f32.mrb[0].mxu1 }
 0x1fc   :  { %v244_v24 = vadd.f32 %v243_v23, %v176_v22  ;;  %v554_v25 = vpop.f32.mrb[1].mxu1 }
 0x1fe   :  { %v247_v26 = vmax.f32 %v244_v24, 0.0 }
 0x200   :  { %588 = vmatmul.mubr.f32.vlgmr.msra.gmra.mrb[2].mxu0 %v247_v26 }
 0x2d3   :  { %v334_v32 = vpop.f32.mrb[2].mxu0 }
 0x2d4   :  { %v335_v33 = vadd.f32 %v334_v32, %v267_v31  ;;  %v589_v0 = vpop.f32.mrb[3].mxu0 }
 0x2d6   :  { %v338_v34 = vmax.f32 %v335_v33, 0.0 }
 0x2d8   :  { %623 = vmatmul.mubr.f32.vlgmr.msra.gmra.mrb[2].mxu1 %v338_v34 }
 0x3ab   :  { %v425_v37 = vpop.f32.mrb[2].mxu1 }
 0x3ac   :  { %v426_v38 = vadd.f32 %v425_v37, %v358_v36  ;;  %v624_v39 = vpop.f32.mrb[3].mxu1 }
 0x3ae   :  { %710 = vtanh.f32 %v426_v38 }
 0x3b8   :  { %v711_v44 = vpop.eup %710 }
 0x3b9   :  { %v434_v45 = vmul.f32 %v711_v44, %v433_v42 }
 0x3bb   :  { %v439_v46 = vadd.f32 %v438_v43, %v434_v45 }
 0x3bd   :  { %440 = vst [vmem:[#allocation10] sm:$0xff] %v439_v46 }
 0x3be   :  { %811 = shalt.err (!%p808_p8)
}
 0x3bf   :  { %s812_s19 = scalar_lea.hbm %s996_s5, 128 }
 0x3c0   :  { %p813_p9 = scmp.ne.s32.totalorder %s996_s5, %s812_s19  ;;  %p816_p10 = scmp.lt.u32.totalorder %s812_s19, %s996_s5 }
 0x3c2   :  { %p818_p11 = pnand %p816_p10, %p813_p9 }
 0x3c4   :  { %821 = shalt.err (!%p818_p11)
}
 0x3c5   :  { %450 = dma.vmem_to_hbm [thread:$0]  %s448_s29, 128, %s996_s5, [#allocation4]  }
 0x3c6   :  { %828 = dma.done.wait [#allocation4], 128  }
 0x3c7   :  { %829 = vsyncadd [#allocation4], 4294967168 }
 0x3c8   :  { %454 = vsyncpa [#allocation3], 1 }
 0x3c9   :  { %455 = vsyncpa [#allocation6], 1 }
 0x3ca   :  { %456 = vsyncpa [#allocation9], 1 }
 0x3cb   :  { %457 = vsyncpa [#allocation4], 1 }

</bundles_post_ra>
